<compile_context>
chip_gen: v7x
topology: tpu7x:2x2x1
jax: 0.10.0
libtpu: 0.0.40
codegen_flags: <defaults>
</compile_context>

<pallas_src>
import functools

import jax
import jax.numpy as jnp
from jax.experimental import pallas as pl
from jax.experimental.pallas import tpu as pltpu


def _seq_attn_kernel(*refs, identity: bool, return_alpha: bool):
    """One grid step == one batch element.

    refs (identity=False): x_ref (1,L1,H), y_ref (1,L2,H), w_ref (H,H) [W^T],
                           b_ref (1,H), o_ref (1,L1,H) [, alpha_ref (1,L1,L2)]
    refs (identity=True):  x_ref, y_ref, o_ref [, alpha_ref]
    """
    if identity:
        x_ref, y_ref, *o_refs = refs
    else:
        x_ref, y_ref, w_ref, b_ref, *o_refs = refs

    x = x_ref[0]                       # (L1, H)
    y = y_ref[0]                       # (L2, H)

    if identity:
        x_proj = x.astype(jnp.float32)
        y_proj = y.astype(jnp.float32)
    else:
        w = w_ref[...]                 # (H, H) == W^T, so proj = x @ w + b
        b2 = b_ref[...]                # (1, H) -- keep 2-D for clean broadcast
        x_proj = jnp.maximum(
            jnp.dot(x, w, preferred_element_type=jnp.float32) + b2, 0.0)
        y_proj = jnp.maximum(
            jnp.dot(y, w, preferred_element_type=jnp.float32) + b2, 0.0)

    # scores[i, j] = <x_proj[i, :], y_proj[j, :]>  (contract on H, no transpose)
    scores = jax.lax.dot_general(
        x_proj, y_proj,
        dimension_numbers=(((1,), (1,)), ((), ())),
        preferred_element_type=jnp.float32)          # (L1, L2) f32

    # "GLBNorm": softmax over ALL L1*L2 scores of this batch element.
    m = jnp.max(scores, axis=1, keepdims=True)       # (L1, 1)  lane reduce
    m = jnp.max(m, axis=0, keepdims=True)            # (1, 1)   sublane reduce
    e = jnp.exp(scores - m)
    z = jnp.sum(e, axis=1, keepdims=True)            # (L1, 1)
    z = jnp.sum(z, axis=0, keepdims=True)            # (1, 1)
    alpha = e * (1.0 / z)                            # (L1, L2) f32

    # matched = alpha @ y  (uses the ORIGINAL y, per the PyTorch module).
    matched = jnp.dot(alpha.astype(y.dtype), y,
                      preferred_element_type=jnp.float32)
    o_refs[0][0] = matched.astype(o_refs[0].dtype)
    if return_alpha:
        o_refs[1][0] = alpha.astype(o_refs[1].dtype)


def seq_attn_match_glb_norm_no_mask(x, y, weight=None, bias=None,
                                    need_attention=False):
    """x: (B, L1, H), y: (B, L2, H); weight: (H, H), bias: (H,) (PyTorch Linear).

    weight=None reproduces identity=True (no projection, no ReLU).
    Returns matched_seq (B, L1, H) [, alpha (B, L1, L2)].
    """
    B, L1, H = x.shape
    By, L2, Hy = y.shape
    assert B == By and H == Hy, (x.shape, y.shape)
    identity = weight is None

    kernel = functools.partial(_seq_attn_kernel, identity=identity,
                               return_alpha=need_attention)

    in_specs = [
        pl.BlockSpec((1, L1, H), lambda b: (b, 0, 0)),
        pl.BlockSpec((1, L2, H), lambda b: (b, 0, 0)),
    ]
    args = [x, y]
    if not identity:
        w_t = jnp.transpose(weight)          # (H, H): tiny one-time re-layout
        b_2d = bias.reshape(1, H)
        in_specs += [
            pl.BlockSpec((H, H), lambda b: (0, 0)),
            pl.BlockSpec((1, H), lambda b: (0, 0)),
        ]
        args += [w_t, b_2d]

    out_shapes = [jax.ShapeDtypeStruct((B, L1, H), x.dtype)]
    out_specs = [pl.BlockSpec((1, L1, H), lambda b: (b, 0, 0))]
    if need_attention:
        out_shapes.append(jax.ShapeDtypeStruct((B, L1, L2), jnp.float32))
        out_specs.append(pl.BlockSpec((1, L1, L2), lambda b: (b, 0, 0)))

    out = pl.pallas_call(
        kernel,
        out_shape=tuple(out_shapes),
        grid_spec=pltpu.PrefetchScalarGridSpec(
            num_scalar_prefetch=0,
            grid=(B,),
            in_specs=in_specs,
            out_specs=tuple(out_specs),
        ),
        compiler_params=pltpu.CompilerParams(
            dimension_semantics=("parallel",)),
    )(*args)

    if need_attention:
        return out[0], out[1]
    return out[0]


def init_params(key, input_size):
    """Deterministic stand-in for nn.Linear(input_size, input_size) params."""
    kw, kb = jax.random.split(key)
    bound = 1.0 / jnp.sqrt(input_size)
    weight = jax.random.uniform(kw, (input_size, input_size),
                                minval=-bound, maxval=bound, dtype=jnp.float32)
    bias = jax.random.uniform(kb, (input_size,),
                              minval=-bound, maxval=bound, dtype=jnp.float32)
    return weight, bias


if __name__ == "__main__":
    key = jax.random.PRNGKey(0)
    kx, ky, kp = jax.random.split(key, 3)

    B, L1, L2, H = 2, 8, 16, 32
    x = jax.random.normal(kx, (B, L1, H), dtype=jnp.float32)
    y = jax.random.normal(ky, (B, L2, H), dtype=jnp.float32)
    weight, bias = init_params(kp, input_size=H)

    matched, alpha = seq_attn_match_glb_norm_no_mask(
        x, y, weight, bias, need_attention=True)
    matched = jax.block_until_ready(matched)
    alpha = jax.block_until_ready(alpha)
    assert matched.shape == (B, L1, H), matched.shape
    assert alpha.shape == (B, L1, L2), alpha.shape

    # Pure-JAX reference (mirrors the PyTorch forward, identity=False).
    x_proj = jax.nn.relu(x @ weight.T + bias)
    y_proj = jax.nn.relu(y @ weight.T + bias)
    scores = jnp.einsum("bih,bjh->bij", x_proj, y_proj)
    alpha_ref = jax.nn.softmax(scores.reshape(B, -1), axis=-1).reshape(B, L1, L2)
    matched_ref = jnp.einsum("bij,bjh->bih", alpha_ref, y)

    assert jnp.allclose(matched, matched_ref, atol=1e-3, rtol=1e-3)
    assert jnp.allclose(alpha, alpha_ref, atol=1e-3, rtol=1e-3)

    # Default path (need_attention=False) returns matched_seq only.
    matched_only = jax.block_until_ready(
        seq_attn_match_glb_norm_no_mask(x, y, weight, bias))
    assert jnp.allclose(matched_only, matched_ref, atol=1e-3, rtol=1e-3)

    print("KERNEL_OK")
</pallas_src>

<mosaic_0001>
module attributes {stable_mosaic.version = 11 : i64} {
  func.func @_seq_attn_kernel(%arg0: i32, %arg1: memref<1x8x32xf32, #tpu.memory_space<vmem>>, %arg2: memref<1x16x32xf32, #tpu.memory_space<vmem>>, %arg3: memref<32x32xf32, #tpu.memory_space<vmem>>, %arg4: memref<1x32xf32, #tpu.memory_space<vmem>>, %arg5: memref<1x8x32xf32, #tpu.memory_space<vmem>>, %arg6: memref<1x8x16xf32, #tpu.memory_space<vmem>>) attributes {dimension_semantics = [#tpu.dimension_semantics<parallel>], iteration_bounds = array<i64: 2>, scalar_prefetch = 0 : i64, scratch_operands = 0 : i64, tpu.core_type = #tpu.core_type<tc>, window_params = [{transform_indices = @transform_0, window_bounds = array<i64: 1, 8, 32>}, {transform_indices = @transform_1, window_bounds = array<i64: 1, 16, 32>}, {pipeline_mode = #tpu.pipeline_mode<synchronous>, transform_indices = @transform_2, window_bounds = array<i64: 32, 32>}, {pipeline_mode = #tpu.pipeline_mode<synchronous>, transform_indices = @transform_3, window_bounds = array<i64: 1, 32>}, {transform_indices = @transform_4, window_bounds = array<i64: 1, 8, 32>}, {transform_indices = @transform_5, window_bounds = array<i64: 1, 8, 16>}]} {
    %c0 = arith.constant 0 : index
    %c0_0 = arith.constant 0 : index
    %c0_1 = arith.constant 0 : index
    %0 = vector.load %arg1[%c0, %c0_0, %c0_1] : memref<1x8x32xf32, #tpu.memory_space<vmem>>, vector<1x8x32xf32>
    %1 = vector.shape_cast %0 : vector<1x8x32xf32> to vector<8x32xf32>
    %c0_2 = arith.constant 0 : index
    %c0_3 = arith.constant 0 : index
    %c0_4 = arith.constant 0 : index
    %2 = vector.load %arg2[%c0_2, %c0_3, %c0_4] : memref<1x16x32xf32, #tpu.memory_space<vmem>>, vector<1x16x32xf32>
    %3 = vector.shape_cast %2 : vector<1x16x32xf32> to vector<16x32xf32>
    %c0_5 = arith.constant 0 : index
    %c0_6 = arith.constant 0 : index
    %4 = vector.load %arg3[%c0_5, %c0_6] : memref<32x32xf32, #tpu.memory_space<vmem>>, vector<32x32xf32>
    %c0_7 = arith.constant 0 : index
    %c0_8 = arith.constant 0 : index
    %5 = vector.load %arg4[%c0_7, %c0_8] : memref<1x32xf32, #tpu.memory_space<vmem>>, vector<1x32xf32>
    %cst = arith.constant dense<0.000000e+00> : vector<8x32xf32>
    %6 = tpu.matmul %1, %4, %cst {dimension_numbers = #tpu.dot_dimension_numbers<[1], [0], [0], [1], [0, 0, 1, 1], [], []>} : vector<8x32xf32>, vector<32x32xf32>, vector<8x32xf32> -> vector<8x32xf32>
    %7 = vector.broadcast %5 : vector<1x32xf32> to vector<8x32xf32>
    %8 = arith.addf %6, %7 : vector<8x32xf32>
    %cst_9 = arith.constant 0.000000e+00 : f32
    %9 = vector.broadcast %cst_9 : f32 to vector<8x32xf32>
    %10 = arith.maximumf %8, %9 : vector<8x32xf32>
    %cst_10 = arith.constant dense<0.000000e+00> : vector<16x32xf32>
    %11 = tpu.matmul %3, %4, %cst_10 {dimension_numbers = #tpu.dot_dimension_numbers<[1], [0], [0], [1], [0, 0, 1, 1], [], []>} : vector<16x32xf32>, vector<32x32xf32>, vector<16x32xf32> -> vector<16x32xf32>
    %12 = vector.broadcast %5 : vector<1x32xf32> to vector<16x32xf32>
    %13 = arith.addf %11, %12 : vector<16x32xf32>
    %cst_11 = arith.constant 0.000000e+00 : f32
    %14 = vector.broadcast %cst_11 : f32 to vector<16x32xf32>
    %15 = arith.maximumf %13, %14 : vector<16x32xf32>
    %cst_12 = arith.constant dense<0.000000e+00> : vector<8x16xf32>
    %16 = tpu.matmul %10, %15, %cst_12 {dimension_numbers = #tpu.dot_dimension_numbers<[1], [1], [0], [0], [0, 0, 1, 0], [], []>} : vector<8x32xf32>, vector<16x32xf32>, vector<8x16xf32> -> vector<8x16xf32>
    %cst_13 = arith.constant dense<0xFF800000> : vector<8xf32>
    %17 = vector.multi_reduction <maximumf>, %16, %cst_13 [1] : vector<8x16xf32> to vector<8xf32>
    %18 = vector.shape_cast %17 : vector<8xf32> to vector<8x1xf32>
    %cst_14 = arith.constant dense<0xFF800000> : vector<1xf32>
    %19 = vector.multi_reduction <maximumf>, %18, %cst_14 [0] : vector<8x1xf32> to vector<1xf32>
    %20 = vector.shape_cast %19 : vector<1xf32> to vector<1x1xf32>
    %21 = vector.broadcast %20 : vector<1x1xf32> to vector<8x16xf32>
    %22 = arith.subf %16, %21 : vector<8x16xf32>
    %23 = math.exp %22 : vector<8x16xf32>
    %cst_15 = arith.constant dense<0.000000e+00> : vector<8xf32>
    %24 = vector.multi_reduction <add>, %23, %cst_15 [1] : vector<8x16xf32> to vector<8xf32>
    %25 = vector.shape_cast %24 : vector<8xf32> to vector<8x1xf32>
    %cst_16 = arith.constant dense<0.000000e+00> : vector<1xf32>
    %26 = vector.multi_reduction <add>, %25, %cst_16 [0] : vector<8x1xf32> to vector<1xf32>
    %27 = vector.shape_cast %26 : vector<1xf32> to vector<1x1xf32>
    %cst_17 = arith.constant 1.000000e+00 : f32
    %28 = vector.broadcast %cst_17 : f32 to vector<1x1xf32>
    %29 = arith.divf %28, %27 : vector<1x1xf32>
    %30 = vector.broadcast %29 : vector<1x1xf32> to vector<8x16xf32>
    %31 = arith.mulf %23, %30 : vector<8x16xf32>
    %cst_18 = arith.constant dense<0.000000e+00> : vector<8x32xf32>
    %32 = tpu.matmul %31, %3, %cst_18 {dimension_numbers = #tpu.dot_dimension_numbers<[1], [0], [0], [1], [0, 0, 1, 1], [], []>} : vector<8x16xf32>, vector<16x32xf32>, vector<8x32xf32> -> vector<8x32xf32>
    %c0_19 = arith.constant 0 : index
    %c0_20 = arith.constant 0 : index
    %c0_21 = arith.constant 0 : index
    %33 = vector.load %arg5[%c0_19, %c0_20, %c0_21] : memref<1x8x32xf32, #tpu.memory_space<vmem>>, vector<1x8x32xf32>
    %34 = vector.shape_cast %33 : vector<1x8x32xf32> to vector<8x32xf32>
    %35 = vector.shape_cast %32 : vector<8x32xf32> to vector<1x8x32xf32>
    tpu.vector_store %arg5[%c0_19, %c0_20, %c0_21], %35 {strides = array<i32>} : memref<1x8x32xf32, #tpu.memory_space<vmem>>, vector<1x8x32xf32>,
    %c0_22 = arith.constant 0 : index
    %c0_23 = arith.constant 0 : index
    %c0_24 = arith.constant 0 : index
    %36 = vector.load %arg6[%c0_22, %c0_23, %c0_24] : memref<1x8x16xf32, #tpu.memory_space<vmem>>, vector<1x8x16xf32>
    %37 = vector.shape_cast %36 : vector<1x8x16xf32> to vector<8x16xf32>
    %38 = vector.shape_cast %31 : vector<8x16xf32> to vector<1x8x16xf32>
    tpu.vector_store %arg6[%c0_22, %c0_23, %c0_24], %38 {strides = array<i32>} : memref<1x8x16xf32, #tpu.memory_space<vmem>>, vector<1x8x16xf32>,
    return
  }
  func.func @transform_0(%arg0: i32) -> (i32, i32, i32) {
    %c0_i32 = arith.constant 0 : i32
    %c0_i32_0 = arith.constant 0 : i32
    %c0_i32_1 = arith.constant 0 : i32
    return %arg0, %c0_i32, %c0_i32_0 : i32, i32, i32
  }
  func.func @transform_1(%arg0: i32) -> (i32, i32, i32) {
    %c0_i32 = arith.constant 0 : i32
    %c0_i32_0 = arith.constant 0 : i32
    %c0_i32_1 = arith.constant 0 : i32
    return %arg0, %c0_i32, %c0_i32_0 : i32, i32, i32
  }
  func.func @transform_2(%arg0: i32) -> (i32, i32) {
    %c0_i32 = arith.constant 0 : i32
    %c0_i32_0 = arith.constant 0 : i32
    %c0_i32_1 = arith.constant 0 : i32
    return %c0_i32, %c0_i32_0 : i32, i32
  }
  func.func @transform_3(%arg0: i32) -> (i32, i32) {
    %c0_i32 = arith.constant 0 : i32
    %c0_i32_0 = arith.constant 0 : i32
    %c0_i32_1 = arith.constant 0 : i32
    return %c0_i32, %c0_i32_0 : i32, i32
  }
  func.func @transform_4(%arg0: i32) -> (i32, i32, i32) {
    %c0_i32 = arith.constant 0 : i32
    %c0_i32_0 = arith.constant 0 : i32
    %c0_i32_1 = arith.constant 0 : i32
    return %arg0, %c0_i32, %c0_i32_0 : i32, i32, i32
  }
  func.func @transform_5(%arg0: i32) -> (i32, i32, i32) {
    %c0_i32 = arith.constant 0 : i32
    %c0_i32_0 = arith.constant 0 : i32
    %c0_i32_1 = arith.constant 0 : i32
    return %arg0, %c0_i32, %c0_i32_0 : i32, i32, i32
  }
}

</mosaic_0001>

<bundles_post_ra>
// kernel: tpu_custom_call.1
= control target key start
LH: loop header
LB: loop body
LE: loop exit
PB: predicated region body
PF: predicated region fallthrough
CT: control target
= control target key end

     0   :  { %s1539_s0 = inlined_call_operand.hbm [shape: f32[2,8,32], index: 0, kind: input, shape index: {}]   ;;  %s1540_s1 = inlined_call_operand.hbm [shape: f32[2,16,32], index: 1, kind: input, shape index: {}]   ;;  %s1541_s2 = inlined_call_operand.hbm [shape: f32[32,32], index: 2, kind: input, shape index: {}]   ;;  %s1542_s3 = inlined_call_operand.vmem [shape: f32[1,32], index: 3, kind: input, shape index: {}]   ;;  %s1543_s4 = inlined_call_operand.hbm [shape: f32[2,8,32], index: 4, kind: output, shape index: {0}]   ;;  %s1544_s5 = inlined_call_operand.hbm [shape: f32[2,8,16], index: 5, kind: output, shape index: {1}]  }
   0x1   :  { %1550 = sst [smem:[#allocation16_spill]] %s1539_s0 }
   0x2   :  { %11 = vsyncpa [#allocation3], 0 }
   0x3   :  { %13 = vsyncpa [#allocation3 + $0x1], 0 }
   0x4   :  { %14 = vsyncpa [#allocation6], 0 }
   0x5   :  { %16 = vsyncpa [#allocation6 + $0x1], 0 }
   0x6   :  { %17 = vsyncpa [#allocation4], 0 }
   0x7   :  { %19 = vsyncpa [#allocation4 + $0x1], 0 }
   0x8   :  { %20 = vsyncpa [#allocation10], 0 }
   0x9   :  { %22 = vsyncpa [#allocation10 + $0x1], 0  ;;  %s1238_s18 = smov 0   ;;  %s1240_s19 = smov 0  }
   0xa   :  { %s1242_s20 = smov 0   ;;  %s1244_s21 = smov 0  }
   0xb LB: > { %s1259_s22 = sadd.s32 4294967295, %s1196_s21   ;;  %s822_s23 = sadd.s32 4294967294, %s1196_s21   ;;  %s1196_s21 = sphi %s1244_s21, %s1570_s21   ;;  %s1192_s20 = sphi %s1242_s20, %s1569_s20   ;;  %s1188_s19 = sphi %s1240_s19, %s1568_s19   ;;  %s1184_s18 = sphi %s1238_s18, %s1567_s18  }
   0xc   : > { %p48_p0 = scmp.ne.s32.totalorder %s1188_s19, %s1184_s18  ;;  %p1545_p1 = scmp.eq.s32.totalorder %s1259_s22, 0 }
   0xd   : > { %p146_p3 = scmp.eq.s32.totalorder %s822_s23, 1  ;;  %p823_p5 = scmp.ge.s32.totalorder %s1196_s21, 1 }
   0xe   : > { %p1268_p4 = por %p1545_p1, %p48_p0  ;;  %p179_p7 = scmp.lt.s32.totalorder %s1196_s21, 3 }
   0xf   : > { %p1273_p6 = por %p146_p3, %p48_p0  ;;  %s1198_s27 = smov [#allocation7]  }
  0x10   : > { %s1551_s24 = scalar_select %p1268_p4, 1, 0 }
  0x11   : > { %s1552_s25 = scalar_select %p1273_p6, 1, 0 }
  0x12   : > { %p1278_p8 = pnand %p823_p5, %p179_p7  ;;  %s191_s28 = sshll.u32 %s1198_s27, 4  ;;  %s1282_s28 = int_to_ptr.vmem [resolvable:$true] %s191_s28 }
  0x13   : > { %s1294_s30 = sadd.s32 1, %s1196_s21   ;;  %s35_s6 = sadd.s32 1, %s1192_s20 }
  0x14   : > { %s1553_s26 = scalar_select %p1278_p8, 1, 0 }
  0x15   : > { %p938_p9 = pneg %p1278_p8  ;;  %s32_s7 = ssub.s32 %s1196_s21, %s1294_s30 }
  0x16   : > { %s1002_s10 = scalar_lea.hbm %s1541_s2, 512 }
  0x17   : > { %p1289_p11 = pnand %p938_p9, %p1545_p1  ;;  %p1003_p12 = scmp.ne.s32.totalorder %s1541_s2, %s1002_s10 }
  0x18   : > { %p1009_p5 = scmp.lt.u32.totalorder %s1002_s10, %s1541_s2 }
  0x19   : > { %p1004_p13 = pneg %p1289_p11 }
  0x1b   : > { %p1005_p0 = pnand %p1004_p13, %p1003_p12 }
  0x1d   : > { %p1006_p3 = pneg %p1005_p0 }
  0x1f   : > { %p1011_p7 = pnand %p1009_p5, %p1006_p3 }
  0x21   : > { %1014 = shalt.err (!%p1011_p7)
}
  0x22   : > { %s1015_s15 = scalar_lea.vmem %s1282_s28, 512  ;;  %p1023_p2 = scmp.lt.s32.totalorder %s1282_s28, %s1282_s28 }
  0x23   : > { %p1016_p9 = scmp.ne.s32.totalorder %s1282_s28, %s1015_s15  ;;  %p1024_p6 = scmp.lt.s32.totalorder %s1015_s15, %s1015_s15 }
  0x25   : > { %p1018_p10 = pnand %p1016_p9, %p1004_p13  ;;  %p1025_p4 = por %p1024_p6, %p1023_p2 }
  0x27   : > { %p1019_p1 = pneg %p1018_p10 }
  0x29   : > { %p1026_p8 = pnand %p1025_p4, %p1019_p1 }
  0x2b   : > { %1029 = shalt.err (!%p1026_p8)
}
  0x2c   : > { %s1548_s16 = smov 128   ;;  %s1549_s17 = smov 8  }
  0x2d   : > { %941 = dma.hbm_to_vmem [thread:$0]  (!%p1289_p11), %s1541_s2, 512, %s1282_s28, [#allocation6], %s1548_s16, %s1548_s16, %s1549_s17  }
  0x2e   : > { %p33_p1 = scmp.eq.s32.totalorder %s32_s7, 0  ;;  %p42_p2 = scmp.ne.s32.totalorder %s1192_s20, %s1188_s19 }
  0x2f   : > { %p43_p4 = scmp.eq.s32.totalorder %s1196_s21, 0  ;;  %p957_p6 = scmp.lt.s32.totalorder %s1196_s21, 2 }
  0x30   : > { %s1328_s8 = scalar_select %p33_p1, %s1192_s20, %s35_s6  }
  0x31   : > { %p44_p8 = por %p43_p4, %p42_p2  ;;  %p1555_p10 = scmp.eq.s32.totalorder %s1259_s22, 1 }
  0x32   : > { %s1337_s29 = sand.u32 1, %s1192_s20   ;;  %s827_s10 = sshll.u32 %s1196_s21, 7 }
  0x33   : > { %p1332_p12 = por %p1555_p10, %p42_p2  ;;  %s826_s11 = sshll.u32 %s1337_s29, 3 }
  0x34   : > { %s1557_s0 = sld [smem:[#allocation16_spill]]  ;;  %s212_s6 = scalar_lea.vmem [#allocation2], %s826_s11 }
  0x35   : > { %s219_s13 = sshll.u32 %s212_s6, 4  ;;  %p1346_p11 = pnand %p957_p6, %p44_p8  ;;  %s1350_s13 = int_to_ptr.vmem [resolvable:$true] %s219_s13 }
  0x36   : > { %s828_s15 = sshll.u32 %s1337_s29, 4  ;;  %s209_s23 = scalar_lea.sflag [#allocation3], %s1337_s29 }
  0x37   : > { %p1032_p0 = pneg %p1346_p11 }
  0x3a   : > { %s1344_s12 = scalar_lea.hbm %s1557_s0, %s827_s10  ;;  %s1035_s28 = scalar_lea.hbm %s1557_s0, 256 }
  0x3b   : > { %s1030_s27 = scalar_lea.hbm %s1344_s12, 128  ;;  %p1036_p7 = scmp.lt.u32.totalorder %s1344_s12, %s1557_s0 }
  0x3c   : > { %p1031_p13 = scmp.ne.s32.totalorder %s1344_s12, %s1030_s27  ;;  %p1037_p9 = scmp.lt.u32.totalorder %s1035_s28, %s1030_s27 }
  0x3d   : > { %p1039_p2 = scmp.lt.u32.totalorder %s1030_s27, %s1344_s12 }
  0x3e   : > { %p1033_p3 = pnand %p1032_p0, %p1031_p13  ;;  %p1038_p1 = por %p1037_p9, %p1036_p7 }
  0x40   : > { %p1034_p5 = pneg %p1033_p3  ;;  %p1040_p4 = por %p1039_p2, %p1038_p1 }
  0x42   : > { %p1041_p6 = pnand %p1040_p4, %p1034_p5 }
  0x44   : > { %1044 = shalt.err (!%p1041_p6)
}
  0x45   : > { %s1045_s16 = scalar_lea.vmem %s1350_s13, 128  ;;  %s1201_s10 = smov [#allocation2]  }
  0x46   : > { %p1046_p8 = scmp.ne.s32.totalorder %s1350_s13, %s1045_s16  ;;  %s1050_s11 = sshll.u32 %s1201_s10, 4  ;;  %s1051_s11 = int_to_ptr.vmem [resolvable:$false] %s1050_s11 }
  0x47   : > { %s1052_s7 = scalar_lea.vmem %s1051_s11, 256  ;;  %p1053_p3 = scmp.lt.s32.totalorder %s1350_s13, %s1051_s11 }
  0x48   : > { %p1048_p10 = pnand %p1046_p8, %p1032_p0  ;;  %p1054_p7 = scmp.lt.s32.totalorder %s1052_s7, %s1045_s16 }
  0x4a   : > { %p1049_p13 = pneg %p1048_p10  ;;  %p1055_p9 = por %p1054_p7, %p1053_p3 }
  0x4c   : > { %p1056_p1 = pnand %p1055_p9, %p1049_p13 }
  0x4e   : > { %1059 = shalt.err (!%p1056_p1)
}
  0x4f   : > { %945 = dma.hbm_to_vmem [thread:$0]  (!%p1346_p11), %s1344_s12, 128, %s1350_s13, %s209_s23  }
  0x50   : > { %s230_s27 = scalar_lea.vmem [#allocation5], %s828_s15  ;;  %s226_s6 = sand.u32 1, %s1196_s21  }
  0x51   : > { %s237_s28 = sshll.u32 %s230_s27, 4  ;;  %s851_s10 = sshll.u32 %s1196_s21, 8  ;;  %s1382_s28 = int_to_ptr.vmem [resolvable:$true] %s237_s28 }
  0x52   : > { %s1388_s7 = scalar_lea.hbm %s1540_s1, %s851_s10  ;;  %s1390_s17 = scalar_lea.sflag [#allocation6], %s226_s6 }
  0x53   : > { %s1060_s0 = scalar_lea.hbm %s1388_s7, 256  ;;  %s1065_s13 = scalar_lea.hbm %s1540_s1, 512 }
  0x54   : > { %p1061_p5 = scmp.ne.s32.totalorder %s1388_s7, %s1060_s0  ;;  %p1066_p6 = scmp.lt.u32.totalorder %s1388_s7, %s1540_s1 }
  0x55   : > { %p1067_p8 = scmp.lt.u32.totalorder %s1065_s13, %s1060_s0  ;;  %p1069_p13 = scmp.lt.u32.totalorder %s1060_s0, %s1388_s7 }
  0x56   : > { %p1063_p2 = pnand %p1061_p5, %p1032_p0 }
  0x57   : > { %p1068_p10 = por %p1067_p8, %p1066_p6 }
  0x58   : > { %p1064_p4 = pneg %p1063_p2 }
  0x59   : > { %p1070_p3 = por %p1069_p13, %p1068_p10 }
  0x5b   : > { %p1071_p7 = pnand %p1070_p3, %p1064_p4 }
  0x5d   : > { %1074 = shalt.err (!%p1071_p7)
}
  0x5e   : > { %s1075_s27 = scalar_lea.vmem %s1382_s28, 256  ;;  %s1202_s6 = smov [#allocation5]  }
  0x5f   : > { %p1076_p9 = scmp.ne.s32.totalorder %s1382_s28, %s1075_s27  ;;  %s1080_s10 = sshll.u32 %s1202_s6, 4  ;;  %s1081_s10 = int_to_ptr.vmem [resolvable:$false] %s1080_s10 }
  0x60   : > { %s1082_s16 = scalar_lea.vmem %s1081_s10, 512  ;;  %p1083_p2 = scmp.lt.s32.totalorder %s1382_s28, %s1081_s10 }
  0x61   : > { %p1078_p1 = pnand %p1076_p9, %p1032_p0  ;;  %p1084_p6 = scmp.lt.s32.totalorder %s1082_s16, %s1075_s27 }
  0x63   : > { %p1079_p5 = pneg %p1078_p1  ;;  %p1085_p8 = por %p1084_p6, %p1083_p2 }
  0x65   : > { %p1086_p10 = pnand %p1085_p8, %p1079_p5 }
  0x67   : > { %1089 = shalt.err (!%p1086_p10)
}
  0x68   : > { %s1559_s0 = smov 8   ;;  %s1560_s11 = smov 128  }
  0x69   : > { %948 = dma.hbm_to_vmem [thread:$0]  (!%p1346_p11), %s1388_s7, 256, %s1382_s28, %s1390_s17, %s1560_s11, %s1560_s11, %s1559_s0  }
  0x6a   : > { %p1561_p0 = scmp.ne.s32.totalorder %s1553_s26, 0 }
  0x6b   : > { %s1422_s29 = sand.u32 (!%p1561_p0), 1, %s1188_s19   ;;  %p1562_p4 = scmp.ne.s32.totalorder (!%p1561_p0), %s1551_s24, 0 }
  0x6c   : > { %249 = sbr.rel (%p1561_p0) target bundleno = 1135 (0x46f), region = 36  ;;  %s1425_s12 = sshll.u32 (!%p1561_p0), %s1422_s29, 3 }
  0x6d   : > { %s252_s14 = scalar_lea.sflag (!%p1561_p0), [#allocation3], %s1422_s29  ;;  %s255_s13 = scalar_lea.vmem (!%p1561_p0), [#allocation2], %s1425_s12 }
  0x73   : > { %1163 = dma.done.wait (%p1562_p4), %s252_s14, 128  }
  0x74   : > { %1165 = vsyncadd (%p1562_p4), %s252_s14, 4294967168  ;;  %s260_s26 = sand.u32 1, %s1259_s22   ;;  %s833_s17 = sshll.u32 %s1422_s29, 4 }
  0x75   : > { %s261_s28 = scalar_lea.sflag [#allocation6], %s260_s26  ;;  %s264_s7 = scalar_lea.vmem [#allocation5], %s833_s17 }
  0x76   : > { %1167 = dma.done.wait (%p1562_p4), %s261_s28, 256  }
  0x77   : > { %1169 = vsyncadd (%p1562_p4), %s261_s28, 4294967040  ;;  %p1563_p11 = scmp.eq.s32.totalorder %s1259_s22, 0 }
  0x79   : > { %1171 = dma.done.wait (%p1563_p11), [#allocation6], 512   ;;  %p1564_p13 = pmov %p1563_p11 }
  0x7a   : > { %v1203_v0 = vmov 0.0|0.0   ;;  %vm1204_vm0 = vmmov 0   ;;  %v1205_v1 = vmov 0.0   ;;  %vm319_vm1 = vcmask 261120   ;;  %v308_v2 = vld [vmem:[#allocation7] sm:$0xff]  ;;  %v309_v3 = vld [vmem:[#allocation7 + $0x8] sm:$0xff] }
  0x7b   : > { %1173 = vsyncadd (%p1564_p13), [#allocation6], 4294966784  ;;  %905 = vmatprep.subr.bf16.mxu0 %v1203_v0  ;;  %877 = vmatprep.mubr.msk.f32.mxu0 %vm1204_vm0, %v1205_v1  ;;  %v310_v4 = vld [vmem:[#allocation7 + $0x10] sm:$0xff]  ;;  %v906_v5 = vpack.c.bf16 %v309_v3, %v308_v2  ;;  %v311_v6 = vld [vmem:[#allocation7 + $0x18] sm:$0xff]  ;;  %vm556_vm3 = vcmask 130048   ;;  %s304_s23 = scalar_lea.vmem [#allocation9], %s1425_s12 }
  0x7c   : > { %v306_v7 = vld [vmem:[%s264_s7] sm:$0xff]  ;;  %v909_v8 = vpack.c.bf16 %v311_v6, %v310_v4  ;;  %v307_v9 = vld [vmem:[%s264_s7 + $0x8] sm:$0xff]  ;;  %vm921_vm2 = vmpackc.low %vm319_vm1, %vm319_vm1  ;;  %s847_s27 = sshll.u32 %s1259_s22, 7  ;;  %s688_s0 = sshll.u32 %s304_s23, 4  ;;  %s689_s0 = int_to_ptr.vmem [resolvable:$true] %s688_s0 }
  0x7d   : > { %888 = vmatprep.mubr.msk.f32.mxu1 %vm319_vm1, %v306_v7  ;;  %912 = vmatprep.subr.bf16.mxu1 %v906_v5  ;;  %v305_v10 = vld [vmem:[%s255_s13] sm:$0xff]  ;;  %v924_v11 = vpack.c.bf16 %v307_v9, %v306_v7  ;;  %s1468_s16 = scalar_lea.hbm %s1544_s5, %s847_s27  ;;  %s662_s11 = scalar_lea.sflag [#allocation10], %s1422_s29 }
  0x7e   : > { %907 = vmatpush3.bf16.msra.mxu0 %v906_v5  ;;  %914 = vmatpush3.bf16.msra.mxu1 %v906_v5  ;;  %v837_v12 = vld [vmem:[%s1542_s3] ss:$0 sm:$0xff]  ;;  %s1090_s14 = scalar_lea.vmem %s689_s0, 128  ;;  %s1206_s13 = smov [#allocation9]  }
  0x7f   : > { %908 = vmatprep.subr.bf16.mxu0 %v1203_v0  ;;  %916 = vmatprep.subr.bf16.mxu1 %v909_v8  ;;  %p1091_p3 = scmp.ne.s32.totalorder %s689_s0, %s1090_s14  ;;  %s1094_s26 = sshll.u32 %s1206_s13, 4  ;;  %s1095_s26 = int_to_ptr.vmem [resolvable:$false] %s1094_s26 }
  0x80   : > { %s1096_s17 = scalar_lea.vmem %s1095_s26, 256  ;;  %p1097_p1 = scmp.lt.s32.totalorder %s689_s0, %s1095_s26 }
  0x81   : > { %p1092_p7 = pnand %p1091_p3, %p1332_p12  ;;  %p1098_p5 = scmp.lt.s32.totalorder %s1096_s17, %s1090_s14 }
  0x82   : > { %910 = vmatpush3.bf16.msra.mxu0 %v909_v8  ;;  %918 = vmatpush3.bf16.msra.mxu1 %v909_v8 }
  0x83   : > { %919 = vmatprep.subr.bf16.mxu0 %v1203_v0  ;;  %923 = vmatprep.subr.bf16.mxu1 %v1203_v0  ;;  %p1093_p9 = pneg %p1092_p7  ;;  %p1099_p2 = por %p1098_p5, %p1097_p1 }
  0x85   : > { %878 = vmatmul.mubr.msk.f32.vlgmr.msra.gmra.mrb[0].mxu0 %vm319_vm1, %v305_v10  ;;  %889 = vmatmul.mubr.msk.f32.vlgmr.msra.gmra.mrb[0].mxu1 %vm319_vm1, %v307_v9  ;;  %p1100_p6 = pnand %p1099_p2, %p1093_p9 }
  0x86   : > { %895 = vmatprep.mubr.msk.f32.mxu0 %vm1204_vm0, %v1205_v1  ;;  %925 = vmatpush3.bf16.msra.mxu1 %v924_v11 }
  0x87   : > { %902 = vmatprep.mubr.msk.f32.mxu1 %vm1204_vm0, %v1205_v1 }
 0x158   : > { %v389_v13 = vpop.f32.mrb[0].mxu0  ;;  %v890_v14 = vpop.f32.mrb[0].mxu1 }
 0x159   : > { %v879_v15 = vpop.f32.mrb[1].mxu0  ;;  %v472_v16 = vadd.f32 %v890_v14, %v837_v12  ;;  %v466_v17 = vpop.f32.mrb[1].mxu1  ;;  %v390_v22 = vadd.f32 %v837_v12, %v389_v13 }
 0x15a   : > { %v467_v18 = vadd.f32 %v837_v12, %v466_v17 }
 0x15b   : > { %v476_v19 = vmax.f32 %v472_v16, 0.0  ;;  %v393_v23 = vmax.f32 %v390_v22, 0.0 }
 0x15c   : > { %v475_v20 = vmax.f32 %v467_v18, 0.0 }
 0x15e   : > { %v920_v21 = vpack.c.bf16 %v476_v19, %v475_v20 }
 0x160   : > { %922 = vmatpush3.bf16.xpose.msk.msra.mxu0 %vm921_vm2, %v920_v21 }
 0x167   : > { %896 = vmatmul.mubr.msk.f32.vlgmr.msra.gmra.mrb[2].mxu0 %vm319_vm1, %v393_v23 }
 0x23a   : > { %v552_v24 = vpop.f32.mrb[2].mxu0 }
 0x23b   : > { %v897_v25 = vpop.f32.mrb[3].mxu0  ;;  %v557_v26 = vsel %vm556_vm3, %v552_v24, -inf }
 0x23c   : > { %558 = vmax.xlane.f32.xlu0 %v557_v26 }
 0x2c9   : > { %v559_v27 = vpop.xlane.xlu0 %558 }
 0x2ca   : > { %v560_v28 = vrot.slane %v559_v27, 4 }
 0x2cc   : > { %v561_v29 = vmax.f32 %v559_v27, %v560_v28 }
 0x2ce   : > { %v562_v30 = vrot.slane %v561_v29, 2 }
 0x2d0   : > { %v563_v31 = vmax.f32 %v561_v29, %v562_v30 }
 0x2d2   : > { %v564_v32 = vrot.slane %v563_v31, 1 }
 0x2d4   : > { %v565_v33 = vmax.f32 %v563_v31, %v564_v32 }
 0x2d6   : > { %v566_v34 = vsub.f32 %v552_v24, %v565_v33 }
 0x2d8   : > { %v567_v35 = vmul.f32 1.442695, %v566_v34 }
 0x2da   : > { %998 = vpow2.f32 %v567_v35 }
 0x2e4   : > { %v999_v36 = vpop.eup %998 }
 0x2e5   : > { %v569_v37 = vsel %vm556_vm3, %v999_v36, 0.0 }
 0x2e6   : > { %570 = vadd.xlane.f32.xlu0 %v569_v37 }
 0x373   : > { %v571_v38 = vpop.xlane.xlu0 %570 }
 0x374   : > { %v572_v39 = vrot.slane %v571_v38, 4 }
 0x376   : > { %v573_v40 = vadd.f32 %v572_v39, %v571_v38 }
 0x378   : > { %v574_v41 = vrot.slane %v573_v40, 2 }
 0x37a   : > { %v575_v42 = vadd.f32 %v574_v41, %v573_v40 }
 0x37c   : > { %v576_v43 = vrot.slane %v575_v42, 1 }
 0x37e   : > { %v577_v44 = vadd.f32 %v576_v43, %v575_v42 }
 0x380   : > { %1000 = vrcp.f32 %v577_v44 }
 0x38a   : > { %v1001_v45 = vpop.eup %1000 }
 0x38b   : > { %v580_v46 = vmul.f32 %v1001_v45, %v999_v36 }
 0x38d   : > { %903 = vmatmul.mubr.msk.f32.vlgmr.msra.gmra.mrb[2].mxu1 %vm556_vm3, %v580_v46  ;;  %655 = vst.msk [vmem:[%s304_s23] sm:$0xff] %vm556_vm3, %v580_v46 }
 0x38e   : > { %1103 = shalt.err (!%p1100_p6)
}
 0x38f   : > { %s1104_s28 = scalar_lea.hbm %s1468_s16, 128  ;;  %s1108_s15 = scalar_lea.hbm %s1544_s5, 256 }
 0x390   : > { %p1105_p8 = scmp.ne.s32.totalorder %s1468_s16, %s1104_s28  ;;  %p1109_p4 = scmp.lt.u32.totalorder %s1468_s16, %s1544_s5 }
 0x391   : > { %p1110_p11 = scmp.lt.u32.totalorder %s1108_s15, %s1104_s28  ;;  %p1112_p3 = scmp.lt.u32.totalorder %s1104_s28, %s1468_s16 }
 0x392   : > { %p1106_p10 = pnand %p1105_p8, %p1332_p12 }
 0x393   : > { %p1111_p13 = por %p1110_p11, %p1109_p4 }
 0x394   : > { %p1107_p0 = pneg %p1106_p10 }
 0x395   : > { %p1113_p7 = por %p1112_p3, %p1111_p13 }
 0x397   : > { %p1114_p9 = pnand %p1113_p7, %p1107_p0 }
 0x399   : > { %1117 = shalt.err (!%p1114_p9)
}
 0x39a   : > { %935 = dma.vmem_to_hbm [thread:$0]  (%p1332_p12), %s689_s0, 128, %s1468_s16, %s662_s11  }
 0x39b   : > { %s297_s10 = scalar_lea.vmem [#allocation8], %s1425_s12  ;;  %s1494_s17 = scalar_lea.hbm %s1543_s4, %s847_s27 }
 0x39c   : > { %s675_s14 = sshll.u32 %s297_s10, 4  ;;  %s657_s28 = scalar_lea.sflag [#allocation4], %s1422_s29  ;;  %s1496_s14 = int_to_ptr.vmem [resolvable:$true] %s675_s14 }
 0x39d   : > { %s1118_s7 = scalar_lea.vmem %s1496_s14, 128  ;;  %s1207_s22 = smov [#allocation8]  }
 0x39e   : > { %p1119_p1 = scmp.ne.s32.totalorder %s1496_s14, %s1118_s7  ;;  %s1122_s12 = sshll.u32 %s1207_s22, 4  ;;  %s1123_s12 = int_to_ptr.vmem [resolvable:$false] %s1122_s12 }
 0x39f   : > { %s1124_s27 = scalar_lea.vmem %s1123_s12, 256  ;;  %p1125_p6 = scmp.lt.s32.totalorder %s1496_s14, %s1123_s12 }
 0x3a0   : > { %p1120_p5 = pnand %p1119_p1, %p1332_p12  ;;  %p1126_p8 = scmp.lt.s32.totalorder %s1124_s27, %s1118_s7 }
 0x3a2   : > { %p1121_p2 = pneg %p1120_p5  ;;  %p1127_p10 = por %p1126_p8, %p1125_p6 }
 0x3a4   : > { %p1128_p0 = pnand %p1127_p10, %p1121_p2 }
 0x460   : > { %v650_v47 = vpop.f32.mrb[2].mxu1 }
 0x461   : > { %654 = vst.msk [vmem:[%s297_s10] sm:$0xff] %vm319_vm1, %v650_v47  ;;  %v904_v48 = vpop.f32.mrb[3].mxu1 }
 0x462   : > { %1131 = shalt.err (!%p1128_p0)
}
 0x463   : > { %s1132_s29 = scalar_lea.hbm %s1494_s17, 128  ;;  %s1136_s11 = scalar_lea.hbm %s1543_s4, 256 }
 0x464   : > { %p1133_p4 = scmp.ne.s32.totalorder %s1494_s17, %s1132_s29  ;;  %p1137_p3 = scmp.lt.u32.totalorder %s1494_s17, %s1543_s4 }
 0x465   : > { %p1138_p7 = scmp.lt.u32.totalorder %s1136_s11, %s1132_s29  ;;  %p1140_p1 = scmp.lt.u32.totalorder %s1132_s29, %s1494_s17 }
 0x466   : > { %p1134_p11 = pnand %p1133_p4, %p1332_p12 }
 0x467   : > { %p1139_p9 = por %p1138_p7, %p1137_p3 }
 0x468   : > { %p1135_p13 = pneg %p1134_p11 }
 0x469   : > { %p1141_p5 = por %p1140_p1, %p1139_p9 }
 0x46b   : > { %p1142_p2 = pnand %p1141_p5, %p1135_p13 }
 0x46d   : > { %1145 = shalt.err (!%p1142_p2)
}
 0x46e   : > { %934 = dma.vmem_to_hbm [thread:$0]  (%p1332_p12), %s1496_s14, 128, %s1494_s17, %s657_s28  }
 0x46f PF: > { %s700_s23 = sand.u32 1, %s1184_s18   ;;  %p1565_p6 = scmp.ne.s32.totalorder %s1552_s25, 0 }
 0x470   : > { %p1566_p8 = scmp.ge.s32.totalorder %s1196_s21, 2  ;;  %s701_s6 = scalar_lea.sflag [#allocation4], %s700_s23 }
 0x472   : > { %p950_p10 = pnand %p1566_p8, %p1565_p6 }
 0x474   : > { %1175 = dma.done.wait (!%p950_p10), %s701_s6, 128  }
 0x475   : > { %1177 = vsyncadd (!%p950_p10), %s701_s6, 4294967168  ;;  %s710_s10 = scalar_lea.sflag [#allocation10], %s700_s23 }
 0x476   : > { %1179 = dma.done.wait (!%p950_p10), %s710_s10, 128  }
 0x477   : > { %1181 = vsyncadd (!%p950_p10), %s710_s10, 4294967168  ;;  %p25_p12 = scmp.ge.s32.totalorder %s1294_s30, 4   ;;  %s1567_s18 = smov %s1188_s19 }
 0x478   : > { %s1568_s19 = smov %s1192_s20  ;;  %s1569_s20 = smov %s1328_s8 }
 0x479   : > { %s1570_s21 = smov %s1294_s30  ;;  %27 = sbr.rel (!%p25_p12) target bundleno = 11 (0xb), region = 115 }
 0x480   :  { %715 = vsyncpa [#allocation3], 1 }
 0x481   :  { %717 = vsyncpa [#allocation3 + $0x1], 1 }
 0x482   :  { %718 = vsyncpa [#allocation6], 1 }
 0x483   :  { %720 = vsyncpa [#allocation6 + $0x1], 1 }
 0x484   :  { %721 = vsyncpa [#allocation4], 1 }
 0x485   :  { %723 = vsyncpa [#allocation4 + $0x1], 1 }
 0x486   :  { %724 = vsyncpa [#allocation10], 1 }
 0x487   :  { %726 = vsyncpa [#allocation10 + $0x1], 1 }

</bundles_post_ra>
